<compile_context>
chip_gen: v7x
topology: tpu7x:2x2x1
jax: 0.10.0
libtpu: 0.0.40
codegen_flags: <defaults>
</compile_context>

<pallas_src>
import jax
import jax.numpy as jnp
from jax import lax
from jax.experimental import pallas as pl
from jax.experimental.pallas import tpu as pltpu


def garch_lstm_kernel(p_ref, x_ref, o_ref):
    """p_ref: SMEM (13,) f32 packed params; x_ref/o_ref: VMEM (S, SUB, 128) f32."""
    S, SUB, LANES = x_ref.shape

    # ---- packed scalar params (SMEM reads) ----
    omega, alpha, beta = p_ref[0], p_ref[1], p_ref[2]
    wf_x, wf_h, bf = p_ref[3], p_ref[4], p_ref[5]
    wi_x, wi_h, bi = p_ref[6], p_ref[7], p_ref[8]
    wc_x, wc_h, bc = p_ref[9], p_ref[10], p_ref[11]
    w_out = p_ref[12]

    # ---- hoisted scalar -> vector broadcasts (once, outside the time loop) ----
    def pack3(vf, vi, vc):
        # rows [0:SUB)=forget, [SUB:2SUB)=input, [2SUB:3SUB)=candidate
        return jnp.concatenate(
            [jnp.full((SUB, LANES), vf),
             jnp.full((SUB, LANES), vi),
             jnp.full((SUB, LANES), vc)], axis=0)

    # candidate row carries the folded 2x scale for tanh(z) = 2*sigmoid(2z) - 1
    wx_pack = pack3(wf_x, wi_x, 2.0 * wc_x)   # (3*SUB, LANES)
    wh_pack = pack3(wf_h, wi_h, 2.0 * wc_h)
    b_pack = pack3(bf, bi, 2.0 * bc)

    omega_v = jnp.full((SUB, LANES), omega)
    alpha_v = jnp.full((SUB, LANES), alpha)
    beta_v = jnp.full((SUB, LANES), beta)
    w_out_v = jnp.full((SUB, LANES), w_out)

    def step(t, carry):
        mem, sig2 = carry
        xt = x_ref[t]                                   # (SUB, LANES) row load

        # packed forget/input/candidate pre-activations -> one sigmoid push
        xt3 = jnp.concatenate([xt, xt, xt], axis=0)     # (3*SUB, LANES)
        mem3 = jnp.concatenate([mem, mem, mem], axis=0)
        g = jax.nn.sigmoid(xt3 * wx_pack + mem3 * wh_pack + b_pack)
        f_gate = g[0:SUB]
        i_gate = g[SUB:2 * SUB]
        c_sq = 2.0 * g[2 * SUB:3 * SUB] - 1.0           # == tanh(Wc pre-act)

        # GARCH(1,1) conditional variance
        o = omega_v + alpha_v * xt * xt + beta_v * sig2

        mem = f_gate * mem + i_gate * c_sq
        sig2 = o * (1.0 + w_out_v * jnp.tanh(mem))

        o_ref[t] = sig2                                 # per-step row store
        return mem, sig2

    zeros = jnp.zeros((SUB, LANES), jnp.float32)
    lax.fori_loop(0, S, step, (zeros, zeros), unroll=min(8, S))


def garch_lstm_forward(x, params):
    """x: (B, S) float32; params: dict of the module's parameters. Returns (B, S)."""
    B, S = x.shape

    theta = params["THETA"].astype(jnp.float32)
    omega = jax.nn.softplus(theta[0])
    alpha = jax.nn.sigmoid(theta[1])
    beta = (1.0 - alpha) * jax.nn.sigmoid(theta[2])

    packed = jnp.stack(
        [
            omega, alpha, beta,
            params["Wf_w"][0, 0], params["Wf_w"][0, 1], params["Wf_b"][0],
            params["Wi_w"][0, 0], params["Wi_w"][0, 1], params["Wi_b"][0],
            params["Wc_w"][0, 0], params["Wc_w"][0, 1], params["Wc_b"][0],
            params["w_w"][0, 0],
        ]
    ).astype(jnp.float32)

    # lane-dense layout: (S, rows_pad, 128), batch on (sublane, lane)
    LANES = 128
    lane_rows = pl.cdiv(B, LANES)           # 128-wide lane rows needed
    sub = min(8, lane_rows)                 # sublanes of batch per tile
    rows_pad = pl.cdiv(lane_rows, sub) * sub
    b_pad = rows_pad * LANES
    num_tiles = rows_pad // sub

    x_t = jnp.transpose(x.astype(jnp.float32))          # (S, B)
    x_t = jnp.pad(x_t, ((0, 0), (0, b_pad - B)))        # tail batch padding
    x_t = x_t.reshape(S, rows_pad, LANES)

    # VMEM budget: in + out blocks, double-buffered by the auto-pipeline.
    need = 2 * 2 * S * sub * LANES * 4
    vmem_limit = int(min(max(4 * need, 32 * 1024 * 1024), 48 * 1024 * 1024))

    out = pl.pallas_call(
        garch_lstm_kernel,
        out_shape=jax.ShapeDtypeStruct((S, rows_pad, LANES), jnp.float32),
        grid_spec=pltpu.PrefetchScalarGridSpec(
            num_scalar_prefetch=1,
            grid=(num_tiles,),
            in_specs=[pl.BlockSpec((S, sub, LANES), lambda b, p: (0, b, 0))],
            out_specs=pl.BlockSpec((S, sub, LANES), lambda b, p: (0, b, 0)),
        ),
        compiler_params=pltpu.CompilerParams(
            dimension_semantics=("parallel",),
            vmem_limit_bytes=vmem_limit,
        ),
    )(packed, x_t)

    out = out.reshape(S, b_pad)[:, :B]      # drop padded batch lanes
    return jnp.transpose(out)               # back to (B, S)


def reference_forward(x, params):
    """Pure-JAX reference mirroring the PyTorch module exactly."""
    theta = params["THETA"]
    omega = jax.nn.softplus(theta[0])
    alpha = jax.nn.sigmoid(theta[1])
    beta = (1.0 - alpha) * jax.nn.sigmoid(theta[2])

    B, S = x.shape
    mem = jnp.zeros((B, 1), jnp.float32)
    sig2 = jnp.zeros((B, 1), jnp.float32)
    outs = []
    for t in range(S):
        xt = x[:, t:t + 1]
        conc = jnp.concatenate([xt, mem], axis=1)  # (B, 2)
        f_gate = jax.nn.sigmoid(conc @ params["Wf_w"].T + params["Wf_b"])
        i_gate = jax.nn.sigmoid(conc @ params["Wi_w"].T + params["Wi_b"])
        c_sq = jnp.tanh(conc @ params["Wc_w"].T + params["Wc_b"])
        o = omega + alpha * xt * xt + beta * sig2
        mem = f_gate * mem + i_gate * c_sq
        sig2 = o * (1 + jnp.tanh(mem) @ params["w_w"].T)  # w has bias=False
        outs.append(sig2)
    return jnp.concatenate(outs, axis=1)


def init_params(key):
    """Deterministic init matching the PyTorch module's parameter shapes."""
    k1, k2, k3, k4, k5, k6, k7 = jax.random.split(key, 7)
    lim2 = 1.0 / jnp.sqrt(2.0)  # nn.Linear(2, 1) default init bound
    lim1 = 1.0                  # nn.Linear(1, 1) default init bound
    return {
        "THETA": jnp.array([0.0, 0.1, 0.8], jnp.float32),
        "Wf_w": jax.random.uniform(k1, (1, 2), jnp.float32, -lim2, lim2),
        "Wf_b": jax.random.uniform(k2, (1,), jnp.float32, -lim2, lim2),
        "Wi_w": jax.random.uniform(k3, (1, 2), jnp.float32, -lim2, lim2),
        "Wi_b": jax.random.uniform(k4, (1,), jnp.float32, -lim2, lim2),
        "Wc_w": jax.random.uniform(k5, (1, 2), jnp.float32, -lim2, lim2),
        "Wc_b": jax.random.uniform(k6, (1,), jnp.float32, -lim2, lim2),
        "w_w": jax.random.uniform(k7, (1, 1), jnp.float32, -lim1, lim1),
    }


if __name__ == "__main__":
    key = jax.random.PRNGKey(0)
    k_in, k_par = jax.random.split(key)

    # shapes from the PyTorch spec: batch_size=64, seq_length=5
    B, S = 64, 5
    x = jax.random.normal(k_in, (B, S), jnp.float32)
    params = init_params(k_par)

    out = garch_lstm_forward(x, params)
    out = jax.block_until_ready(out)

    ref = reference_forward(x, params)
    assert out.shape == (B, S)
    assert jnp.allclose(out, ref, atol=1e-5, rtol=1e-5), (
        f"max abs err {jnp.max(jnp.abs(out - ref))}"
    )

    print("KERNEL_OK")
</pallas_src>

<mosaic_0001>
module attributes {stable_mosaic.version = 11 : i64} {
  func.func @garch_lstm_kernel(%arg0: i32, %arg1: memref<13xf32, #tpu.memory_space<smem>>, %arg2: memref<5x1x128xf32, #tpu.memory_space<vmem>>, %arg3: memref<5x1x128xf32, #tpu.memory_space<vmem>>) attributes {dimension_semantics = [#tpu.dimension_semantics<parallel>], iteration_bounds = array<i64: 1>, scalar_prefetch = 1 : i64, scratch_operands = 0 : i64, tpu.core_type = #tpu.core_type<tc>, window_params = [{transform_indices = @transform_0, window_bounds = array<i64: 5, 1, 128>}, {transform_indices = @transform_1, window_bounds = array<i64: 5, 1, 128>}]} {
    %c0 = arith.constant 0 : index
    %0 = memref.load %arg1[%c0] : memref<13xf32, #tpu.memory_space<smem>>
    %c1 = arith.constant 1 : index
    %1 = memref.load %arg1[%c1] : memref<13xf32, #tpu.memory_space<smem>>
    %c2 = arith.constant 2 : index
    %2 = memref.load %arg1[%c2] : memref<13xf32, #tpu.memory_space<smem>>
    %c3 = arith.constant 3 : index
    %3 = memref.load %arg1[%c3] : memref<13xf32, #tpu.memory_space<smem>>
    %c4 = arith.constant 4 : index
    %4 = memref.load %arg1[%c4] : memref<13xf32, #tpu.memory_space<smem>>
    %c5 = arith.constant 5 : index
    %5 = memref.load %arg1[%c5] : memref<13xf32, #tpu.memory_space<smem>>
    %c6 = arith.constant 6 : index
    %6 = memref.load %arg1[%c6] : memref<13xf32, #tpu.memory_space<smem>>
    %c7 = arith.constant 7 : index
    %7 = memref.load %arg1[%c7] : memref<13xf32, #tpu.memory_space<smem>>
    %c8 = arith.constant 8 : index
    %8 = memref.load %arg1[%c8] : memref<13xf32, #tpu.memory_space<smem>>
    %c9 = arith.constant 9 : index
    %9 = memref.load %arg1[%c9] : memref<13xf32, #tpu.memory_space<smem>>
    %c10 = arith.constant 10 : index
    %10 = memref.load %arg1[%c10] : memref<13xf32, #tpu.memory_space<smem>>
    %c11 = arith.constant 11 : index
    %11 = memref.load %arg1[%c11] : memref<13xf32, #tpu.memory_space<smem>>
    %c12 = arith.constant 12 : index
    %12 = memref.load %arg1[%c12] : memref<13xf32, #tpu.memory_space<smem>>
    %cst = arith.constant 2.000000e+00 : f32
    %13 = arith.mulf %cst, %9 : f32
    %14 = vector.broadcast %3 : f32 to vector<1x128xf32>
    %15 = vector.broadcast %6 : f32 to vector<1x128xf32>
    %16 = vector.broadcast %13 : f32 to vector<1x128xf32>
    %17 = tpu.concatenate %14, %15, %16 in 0 : vector<1x128xf32>, vector<1x128xf32>, vector<1x128xf32> -> vector<3x128xf32>
    %cst_0 = arith.constant 2.000000e+00 : f32
    %18 = arith.mulf %cst_0, %10 : f32
    %19 = vector.broadcast %4 : f32 to vector<1x128xf32>
    %20 = vector.broadcast %7 : f32 to vector<1x128xf32>
    %21 = vector.broadcast %18 : f32 to vector<1x128xf32>
    %22 = tpu.concatenate %19, %20, %21 in 0 : vector<1x128xf32>, vector<1x128xf32>, vector<1x128xf32> -> vector<3x128xf32>
    %cst_1 = arith.constant 2.000000e+00 : f32
    %23 = arith.mulf %cst_1, %11 : f32
    %24 = vector.broadcast %5 : f32 to vector<1x128xf32>
    %25 = vector.broadcast %8 : f32 to vector<1x128xf32>
    %26 = vector.broadcast %23 : f32 to vector<1x128xf32>
    %27 = tpu.concatenate %24, %25, %26 in 0 : vector<1x128xf32>, vector<1x128xf32>, vector<1x128xf32> -> vector<3x128xf32>
    %28 = vector.broadcast %0 : f32 to vector<1x128xf32>
    %29 = vector.broadcast %1 : f32 to vector<1x128xf32>
    %30 = vector.broadcast %2 : f32 to vector<1x128xf32>
    %31 = vector.broadcast %12 : f32 to vector<1x128xf32>
    %cst_2 = arith.constant 0.000000e+00 : f32
    %32 = vector.broadcast %cst_2 : f32 to vector<1x128xf32>
    %c0_i32 = arith.constant 0 : i32
    %33 = arith.index_cast %c0_i32 : i32 to index
    %c0_3 = arith.constant 0 : index
    %c0_4 = arith.constant 0 : index
    %34 = vector.load %arg2[%33, %c0_3, %c0_4] : memref<5x1x128xf32, #tpu.memory_space<vmem>>, vector<1x1x128xf32>
    %35 = vector.shape_cast %34 : vector<1x1x128xf32> to vector<1x128xf32>
    %36 = tpu.concatenate %35, %35, %35 in 0 : vector<1x128xf32>, vector<1x128xf32>, vector<1x128xf32> -> vector<3x128xf32>
    %37 = tpu.concatenate %32, %32, %32 in 0 : vector<1x128xf32>, vector<1x128xf32>, vector<1x128xf32> -> vector<3x128xf32>
    %38 = arith.mulf %36, %17 : vector<3x128xf32>
    %39 = arith.mulf %37, %22 : vector<3x128xf32>
    %40 = arith.addf %38, %39 : vector<3x128xf32>
    %41 = arith.addf %40, %27 : vector<3x128xf32>
    %42 = arith.negf %41 : vector<3x128xf32>
    %43 = math.exp %42 : vector<3x128xf32>
    %cst_5 = arith.constant 1.000000e+00 : f32
    %44 = vector.broadcast %cst_5 : f32 to vector<3x128xf32>
    %45 = arith.addf %44, %43 : vector<3x128xf32>
    %46 = arith.divf %44, %45 : vector<3x128xf32>
    %47 = vector.extract_strided_slice %46 {offsets = [0, 0], sizes = [1, 128], strides = [1, 1]} : vector<3x128xf32> to vector<1x128xf32>
    %48 = vector.extract_strided_slice %46 {offsets = [1, 0], sizes = [1, 128], strides = [1, 1]} : vector<3x128xf32> to vector<1x128xf32>
    %49 = vector.extract_strided_slice %46 {offsets = [2, 0], sizes = [1, 128], strides = [1, 1]} : vector<3x128xf32> to vector<1x128xf32>
    %cst_6 = arith.constant 2.000000e+00 : f32
    %50 = vector.broadcast %cst_6 : f32 to vector<1x128xf32>
    %51 = arith.mulf %50, %49 : vector<1x128xf32>
    %cst_7 = arith.constant 1.000000e+00 : f32
    %52 = vector.broadcast %cst_7 : f32 to vector<1x128xf32>
    %53 = arith.subf %51, %52 : vector<1x128xf32>
    %54 = arith.mulf %29, %35 : vector<1x128xf32>
    %55 = arith.mulf %54, %35 : vector<1x128xf32>
    %56 = arith.addf %28, %55 : vector<1x128xf32>
    %57 = arith.mulf %30, %32 : vector<1x128xf32>
    %58 = arith.addf %56, %57 : vector<1x128xf32>
    %59 = arith.mulf %47, %32 : vector<1x128xf32>
    %60 = arith.mulf %48, %53 : vector<1x128xf32>
    %61 = arith.addf %59, %60 : vector<1x128xf32>
    %62 = math.tanh %61 : vector<1x128xf32>
    %63 = arith.mulf %31, %62 : vector<1x128xf32>
    %cst_8 = arith.constant 1.000000e+00 : f32
    %64 = vector.broadcast %cst_8 : f32 to vector<1x128xf32>
    %65 = arith.addf %64, %63 : vector<1x128xf32>
    %66 = arith.mulf %58, %65 : vector<1x128xf32>
    %67 = arith.index_cast %c0_i32 : i32 to index
    %c0_9 = arith.constant 0 : index
    %c0_10 = arith.constant 0 : index
    %68 = vector.load %arg3[%67, %c0_9, %c0_10] : memref<5x1x128xf32, #tpu.memory_space<vmem>>, vector<1x1x128xf32>
    %69 = vector.shape_cast %68 : vector<1x1x128xf32> to vector<1x128xf32>
    %70 = vector.shape_cast %66 : vector<1x128xf32> to vector<1x1x128xf32>
    tpu.vector_store %arg3[%67, %c0_9, %c0_10], %70 {strides = array<i32>} : memref<5x1x128xf32, #tpu.memory_space<vmem>>, vector<1x1x128xf32>,
    %c1_i32 = arith.constant 1 : i32
    %71 = arith.index_cast %c1_i32 : i32 to index
    %c0_11 = arith.constant 0 : index
    %c0_12 = arith.constant 0 : index
    %72 = vector.load %arg2[%71, %c0_11, %c0_12] : memref<5x1x128xf32, #tpu.memory_space<vmem>>, vector<1x1x128xf32>
    %73 = vector.shape_cast %72 : vector<1x1x128xf32> to vector<1x128xf32>
    %74 = tpu.concatenate %73, %73, %73 in 0 : vector<1x128xf32>, vector<1x128xf32>, vector<1x128xf32> -> vector<3x128xf32>
    %75 = tpu.concatenate %61, %61, %61 in 0 : vector<1x128xf32>, vector<1x128xf32>, vector<1x128xf32> -> vector<3x128xf32>
    %76 = arith.mulf %74, %17 : vector<3x128xf32>
    %77 = arith.mulf %75, %22 : vector<3x128xf32>
    %78 = arith.addf %76, %77 : vector<3x128xf32>
    %79 = arith.addf %78, %27 : vector<3x128xf32>
    %80 = arith.negf %79 : vector<3x128xf32>
    %81 = math.exp %80 : vector<3x128xf32>
    %cst_13 = arith.constant 1.000000e+00 : f32
    %82 = vector.broadcast %cst_13 : f32 to vector<3x128xf32>
    %83 = arith.addf %82, %81 : vector<3x128xf32>
    %84 = arith.divf %82, %83 : vector<3x128xf32>
    %85 = vector.extract_strided_slice %84 {offsets = [0, 0], sizes = [1, 128], strides = [1, 1]} : vector<3x128xf32> to vector<1x128xf32>
    %86 = vector.extract_strided_slice %84 {offsets = [1, 0], sizes = [1, 128], strides = [1, 1]} : vector<3x128xf32> to vector<1x128xf32>
    %87 = vector.extract_strided_slice %84 {offsets = [2, 0], sizes = [1, 128], strides = [1, 1]} : vector<3x128xf32> to vector<1x128xf32>
    %cst_14 = arith.constant 2.000000e+00 : f32
    %88 = vector.broadcast %cst_14 : f32 to vector<1x128xf32>
    %89 = arith.mulf %88, %87 : vector<1x128xf32>
    %cst_15 = arith.constant 1.000000e+00 : f32
    %90 = vector.broadcast %cst_15 : f32 to vector<1x128xf32>
    %91 = arith.subf %89, %90 : vector<1x128xf32>
    %92 = arith.mulf %29, %73 : vector<1x128xf32>
    %93 = arith.mulf %92, %73 : vector<1x128xf32>
    %94 = arith.addf %28, %93 : vector<1x128xf32>
    %95 = arith.mulf %30, %66 : vector<1x128xf32>
    %96 = arith.addf %94, %95 : vector<1x128xf32>
    %97 = arith.mulf %85, %61 : vector<1x128xf32>
    %98 = arith.mulf %86, %91 : vector<1x128xf32>
    %99 = arith.addf %97, %98 : vector<1x128xf32>
    %100 = math.tanh %99 : vector<1x128xf32>
    %101 = arith.mulf %31, %100 : vector<1x128xf32>
    %cst_16 = arith.constant 1.000000e+00 : f32
    %102 = vector.broadcast %cst_16 : f32 to vector<1x128xf32>
    %103 = arith.addf %102, %101 : vector<1x128xf32>
    %104 = arith.mulf %96, %103 : vector<1x128xf32>
    %105 = arith.index_cast %c1_i32 : i32 to index
    %c0_17 = arith.constant 0 : index
    %c0_18 = arith.constant 0 : index
    %106 = vector.load %arg3[%105, %c0_17, %c0_18] : memref<5x1x128xf32, #tpu.memory_space<vmem>>, vector<1x1x128xf32>
    %107 = vector.shape_cast %106 : vector<1x1x128xf32> to vector<1x128xf32>
    %108 = vector.shape_cast %104 : vector<1x128xf32> to vector<1x1x128xf32>
    tpu.vector_store %arg3[%105, %c0_17, %c0_18], %108 {strides = array<i32>} : memref<5x1x128xf32, #tpu.memory_space<vmem>>, vector<1x1x128xf32>,
    %c2_i32 = arith.constant 2 : i32
    %109 = arith.index_cast %c2_i32 : i32 to index
    %c0_19 = arith.constant 0 : index
    %c0_20 = arith.constant 0 : index
    %110 = vector.load %arg2[%109, %c0_19, %c0_20] : memref<5x1x128xf32, #tpu.memory_space<vmem>>, vector<1x1x128xf32>
    %111 = vector.shape_cast %110 : vector<1x1x128xf32> to vector<1x128xf32>
    %112 = tpu.concatenate %111, %111, %111 in 0 : vector<1x128xf32>, vector<1x128xf32>, vector<1x128xf32> -> vector<3x128xf32>
    %113 = tpu.concatenate %99, %99, %99 in 0 : vector<1x128xf32>, vector<1x128xf32>, vector<1x128xf32> -> vector<3x128xf32>
    %114 = arith.mulf %112, %17 : vector<3x128xf32>
    %115 = arith.mulf %113, %22 : vector<3x128xf32>
    %116 = arith.addf %114, %115 : vector<3x128xf32>
    %117 = arith.addf %116, %27 : vector<3x128xf32>
    %118 = arith.negf %117 : vector<3x128xf32>
    %119 = math.exp %118 : vector<3x128xf32>
    %cst_21 = arith.constant 1.000000e+00 : f32
    %120 = vector.broadcast %cst_21 : f32 to vector<3x128xf32>
    %121 = arith.addf %120, %119 : vector<3x128xf32>
    %122 = arith.divf %120, %121 : vector<3x128xf32>
    %123 = vector.extract_strided_slice %122 {offsets = [0, 0], sizes = [1, 128], strides = [1, 1]} : vector<3x128xf32> to vector<1x128xf32>
    %124 = vector.extract_strided_slice %122 {offsets = [1, 0], sizes = [1, 128], strides = [1, 1]} : vector<3x128xf32> to vector<1x128xf32>
    %125 = vector.extract_strided_slice %122 {offsets = [2, 0], sizes = [1, 128], strides = [1, 1]} : vector<3x128xf32> to vector<1x128xf32>
    %cst_22 = arith.constant 2.000000e+00 : f32
    %126 = vector.broadcast %cst_22 : f32 to vector<1x128xf32>
    %127 = arith.mulf %126, %125 : vector<1x128xf32>
    %cst_23 = arith.constant 1.000000e+00 : f32
    %128 = vector.broadcast %cst_23 : f32 to vector<1x128xf32>
    %129 = arith.subf %127, %128 : vector<1x128xf32>
    %130 = arith.mulf %29, %111 : vector<1x128xf32>
    %131 = arith.mulf %130, %111 : vector<1x128xf32>
    %132 = arith.addf %28, %131 : vector<1x128xf32>
    %133 = arith.mulf %30, %104 : vector<1x128xf32>
    %134 = arith.addf %132, %133 : vector<1x128xf32>
    %135 = arith.mulf %123, %99 : vector<1x128xf32>
    %136 = arith.mulf %124, %129 : vector<1x128xf32>
    %137 = arith.addf %135, %136 : vector<1x128xf32>
    %138 = math.tanh %137 : vector<1x128xf32>
    %139 = arith.mulf %31, %138 : vector<1x128xf32>
    %cst_24 = arith.constant 1.000000e+00 : f32
    %140 = vector.broadcast %cst_24 : f32 to vector<1x128xf32>
    %141 = arith.addf %140, %139 : vector<1x128xf32>
    %142 = arith.mulf %134, %141 : vector<1x128xf32>
    %143 = arith.index_cast %c2_i32 : i32 to index
    %c0_25 = arith.constant 0 : index
    %c0_26 = arith.constant 0 : index
    %144 = vector.load %arg3[%143, %c0_25, %c0_26] : memref<5x1x128xf32, #tpu.memory_space<vmem>>, vector<1x1x128xf32>
    %145 = vector.shape_cast %144 : vector<1x1x128xf32> to vector<1x128xf32>
    %146 = vector.shape_cast %142 : vector<1x128xf32> to vector<1x1x128xf32>
    tpu.vector_store %arg3[%143, %c0_25, %c0_26], %146 {strides = array<i32>} : memref<5x1x128xf32, #tpu.memory_space<vmem>>, vector<1x1x128xf32>,
    %c3_i32 = arith.constant 3 : i32
    %147 = arith.index_cast %c3_i32 : i32 to index
    %c0_27 = arith.constant 0 : index
    %c0_28 = arith.constant 0 : index
    %148 = vector.load %arg2[%147, %c0_27, %c0_28] : memref<5x1x128xf32, #tpu.memory_space<vmem>>, vector<1x1x128xf32>
    %149 = vector.shape_cast %148 : vector<1x1x128xf32> to vector<1x128xf32>
    %150 = tpu.concatenate %149, %149, %149 in 0 : vector<1x128xf32>, vector<1x128xf32>, vector<1x128xf32> -> vector<3x128xf32>
    %151 = tpu.concatenate %137, %137, %137 in 0 : vector<1x128xf32>, vector<1x128xf32>, vector<1x128xf32> -> vector<3x128xf32>
    %152 = arith.mulf %150, %17 : vector<3x128xf32>
    %153 = arith.mulf %151, %22 : vector<3x128xf32>
    %154 = arith.addf %152, %153 : vector<3x128xf32>
    %155 = arith.addf %154, %27 : vector<3x128xf32>
    %156 = arith.negf %155 : vector<3x128xf32>
    %157 = math.exp %156 : vector<3x128xf32>
    %cst_29 = arith.constant 1.000000e+00 : f32
    %158 = vector.broadcast %cst_29 : f32 to vector<3x128xf32>
    %159 = arith.addf %158, %157 : vector<3x128xf32>
    %160 = arith.divf %158, %159 : vector<3x128xf32>
    %161 = vector.extract_strided_slice %160 {offsets = [0, 0], sizes = [1, 128], strides = [1, 1]} : vector<3x128xf32> to vector<1x128xf32>
    %162 = vector.extract_strided_slice %160 {offsets = [1, 0], sizes = [1, 128], strides = [1, 1]} : vector<3x128xf32> to vector<1x128xf32>
    %163 = vector.extract_strided_slice %160 {offsets = [2, 0], sizes = [1, 128], strides = [1, 1]} : vector<3x128xf32> to vector<1x128xf32>
    %cst_30 = arith.constant 2.000000e+00 : f32
    %164 = vector.broadcast %cst_30 : f32 to vector<1x128xf32>
    %165 = arith.mulf %164, %163 : vector<1x128xf32>
    %cst_31 = arith.constant 1.000000e+00 : f32
    %166 = vector.broadcast %cst_31 : f32 to vector<1x128xf32>
    %167 = arith.subf %165, %166 : vector<1x128xf32>
    %168 = arith.mulf %29, %149 : vector<1x128xf32>
    %169 = arith.mulf %168, %149 : vector<1x128xf32>
    %170 = arith.addf %28, %169 : vector<1x128xf32>
    %171 = arith.mulf %30, %142 : vector<1x128xf32>
    %172 = arith.addf %170, %171 : vector<1x128xf32>
    %173 = arith.mulf %161, %137 : vector<1x128xf32>
    %174 = arith.mulf %162, %167 : vector<1x128xf32>
    %175 = arith.addf %173, %174 : vector<1x128xf32>
    %176 = math.tanh %175 : vector<1x128xf32>
    %177 = arith.mulf %31, %176 : vector<1x128xf32>
    %cst_32 = arith.constant 1.000000e+00 : f32
    %178 = vector.broadcast %cst_32 : f32 to vector<1x128xf32>
    %179 = arith.addf %178, %177 : vector<1x128xf32>
    %180 = arith.mulf %172, %179 : vector<1x128xf32>
    %181 = arith.index_cast %c3_i32 : i32 to index
    %c0_33 = arith.constant 0 : index
    %c0_34 = arith.constant 0 : index
    %182 = vector.load %arg3[%181, %c0_33, %c0_34] : memref<5x1x128xf32, #tpu.memory_space<vmem>>, vector<1x1x128xf32>
    %183 = vector.shape_cast %182 : vector<1x1x128xf32> to vector<1x128xf32>
    %184 = vector.shape_cast %180 : vector<1x128xf32> to vector<1x1x128xf32>
    tpu.vector_store %arg3[%181, %c0_33, %c0_34], %184 {strides = array<i32>} : memref<5x1x128xf32, #tpu.memory_space<vmem>>, vector<1x1x128xf32>,
    %c4_i32 = arith.constant 4 : i32
    %185 = arith.index_cast %c4_i32 : i32 to index
    %c0_35 = arith.constant 0 : index
    %c0_36 = arith.constant 0 : index
    %186 = vector.load %arg2[%185, %c0_35, %c0_36] : memref<5x1x128xf32, #tpu.memory_space<vmem>>, vector<1x1x128xf32>
    %187 = vector.shape_cast %186 : vector<1x1x128xf32> to vector<1x128xf32>
    %188 = tpu.concatenate %187, %187, %187 in 0 : vector<1x128xf32>, vector<1x128xf32>, vector<1x128xf32> -> vector<3x128xf32>
    %189 = tpu.concatenate %175, %175, %175 in 0 : vector<1x128xf32>, vector<1x128xf32>, vector<1x128xf32> -> vector<3x128xf32>
    %190 = arith.mulf %188, %17 : vector<3x128xf32>
    %191 = arith.mulf %189, %22 : vector<3x128xf32>
    %192 = arith.addf %190, %191 : vector<3x128xf32>
    %193 = arith.addf %192, %27 : vector<3x128xf32>
    %194 = arith.negf %193 : vector<3x128xf32>
    %195 = math.exp %194 : vector<3x128xf32>
    %cst_37 = arith.constant 1.000000e+00 : f32
    %196 = vector.broadcast %cst_37 : f32 to vector<3x128xf32>
    %197 = arith.addf %196, %195 : vector<3x128xf32>
    %198 = arith.divf %196, %197 : vector<3x128xf32>
    %199 = vector.extract_strided_slice %198 {offsets = [0, 0], sizes = [1, 128], strides = [1, 1]} : vector<3x128xf32> to vector<1x128xf32>
    %200 = vector.extract_strided_slice %198 {offsets = [1, 0], sizes = [1, 128], strides = [1, 1]} : vector<3x128xf32> to vector<1x128xf32>
    %201 = vector.extract_strided_slice %198 {offsets = [2, 0], sizes = [1, 128], strides = [1, 1]} : vector<3x128xf32> to vector<1x128xf32>
    %cst_38 = arith.constant 2.000000e+00 : f32
    %202 = vector.broadcast %cst_38 : f32 to vector<1x128xf32>
    %203 = arith.mulf %202, %201 : vector<1x128xf32>
    %cst_39 = arith.constant 1.000000e+00 : f32
    %204 = vector.broadcast %cst_39 : f32 to vector<1x128xf32>
    %205 = arith.subf %203, %204 : vector<1x128xf32>
    %206 = arith.mulf %29, %187 : vector<1x128xf32>
    %207 = arith.mulf %206, %187 : vector<1x128xf32>
    %208 = arith.addf %28, %207 : vector<1x128xf32>
    %209 = arith.mulf %30, %180 : vector<1x128xf32>
    %210 = arith.addf %208, %209 : vector<1x128xf32>
    %211 = arith.mulf %199, %175 : vector<1x128xf32>
    %212 = arith.mulf %200, %205 : vector<1x128xf32>
    %213 = arith.addf %211, %212 : vector<1x128xf32>
    %214 = math.tanh %213 : vector<1x128xf32>
    %215 = arith.mulf %31, %214 : vector<1x128xf32>
    %cst_40 = arith.constant 1.000000e+00 : f32
    %216 = vector.broadcast %cst_40 : f32 to vector<1x128xf32>
    %217 = arith.addf %216, %215 : vector<1x128xf32>
    %218 = arith.mulf %210, %217 : vector<1x128xf32>
    %219 = arith.index_cast %c4_i32 : i32 to index
    %c0_41 = arith.constant 0 : index
    %c0_42 = arith.constant 0 : index
    %220 = vector.load %arg3[%219, %c0_41, %c0_42] : memref<5x1x128xf32, #tpu.memory_space<vmem>>, vector<1x1x128xf32>
    %221 = vector.shape_cast %220 : vector<1x1x128xf32> to vector<1x128xf32>
    %222 = vector.shape_cast %218 : vector<1x128xf32> to vector<1x1x128xf32>
    tpu.vector_store %arg3[%219, %c0_41, %c0_42], %222 {strides = array<i32>} : memref<5x1x128xf32, #tpu.memory_space<vmem>>, vector<1x1x128xf32>,
    %c5_i32 = arith.constant 5 : i32
    return
  }
  func.func @transform_0(%arg0: i32, %arg1: memref<13xf32, #tpu.memory_space<smem>>) -> (i32, i32, i32) {
    %c0_i32 = arith.constant 0 : i32
    %c0_i32_0 = arith.constant 0 : i32
    %c0_i32_1 = arith.constant 0 : i32
    return %c0_i32, %arg0, %c0_i32_0 : i32, i32, i32
  }
  func.func @transform_1(%arg0: i32, %arg1: memref<13xf32, #tpu.memory_space<smem>>) -> (i32, i32, i32) {
    %c0_i32 = arith.constant 0 : i32
    %c0_i32_0 = arith.constant 0 : i32
    %c0_i32_1 = arith.constant 0 : i32
    return %c0_i32, %arg0, %c0_i32_0 : i32, i32, i32
  }
}

</mosaic_0001>

<bundles_post_ra>
// kernel: tpu_custom_call.1
= control target key start
LH: loop header
LB: loop body
LE: loop exit
PB: predicated region body
PF: predicated region fallthrough
CT: control target
= control target key end

     0   :  { %s577_s0 = inlined_call_operand.hbm [shape: f32[13], index: 0, kind: input, shape index: {}]   ;;  %s578_s1 = inlined_call_operand.hbm [shape: f32[5,1,128], index: 1, kind: input, shape index: {}]   ;;  %s579_s2 = inlined_call_operand.hbm [shape: f32[5,1,128], index: 2, kind: output, shape index: {}]  }
   0x1   :  { %s375_s11 = scalar_lea.hbm %s577_s0, 16 }
   0x2   :  { %p376_p0 = scmp.ne.s32.totalorder %s577_s0, %s375_s11  ;;  %p379_p1 = scmp.lt.u32.totalorder %s375_s11, %s577_s0 }
   0x4   :  { %p381_p2 = pnand %p379_p1, %p376_p0 }
   0x6   :  { %384 = shalt.err (!%p381_p2)  }
   0x7   :  { %s435_s16 = smov [#allocation3]  }
   0x8   :  { %8 = dma.hbm_to_smem %s577_s0, 16, %s435_s16, [#allocation2] }
   0x9   :  { %429 = dma.done.wait [#allocation2], 16 }
   0xa   :  { %430 = vsyncadd [#allocation2], 4294967280 }
   0xb   :  { %10 = sfence }
   0xc   :  { %11 = vsyncpa [#allocation5], 0 }
   0xd   :  { %12 = vsyncpa [#allocation6], 0  ;;  %s436_s19 = smov [#allocation4]   ;;  %s385_s23 = scalar_lea.hbm %s578_s1, 80 }
   0xe   :  { %s18_s20 = sshll.u32 %s436_s19, 4  ;;  %p386_p3 = scmp.ne.s32.totalorder %s578_s1, %s385_s23  ;;  %s19_s20 = int_to_ptr.vmem [resolvable:$true] %s18_s20 }
   0xf   :  { %p389_p4 = scmp.lt.u32.totalorder %s385_s23, %s578_s1 }
  0x11   :  { %p391_p5 = pnand %p389_p4, %p386_p3 }
  0x13   :  { %394 = shalt.err (!%p391_p5)
}
  0x14   :  { %s395_s0 = scalar_lea.vmem %s19_s20, 80  ;;  %s399_s28 = scalar_lea.vmem %s19_s20, 96 }
  0x15   :  { %p396_p6 = scmp.ne.s32.totalorder %s19_s20, %s395_s0  ;;  %p400_p7 = scmp.lt.s32.totalorder %s19_s20, %s19_s20 }
  0x16   :  { %p401_p8 = scmp.lt.s32.totalorder %s399_s28, %s395_s0 }
  0x18   :  { %p402_p9 = por %p401_p8, %p400_p7 }
  0x1a   :  { %p403_p10 = pnand %p402_p9, %p396_p6 }
  0x1c   :  { %406 = shalt.err (!%p403_p10)
}
  0x1d   :  { %s437_s29 = smov 16   ;;  %s438_s30 = smov 1  }
  0x1e   :  { %24 = dma.hbm_to_vmem [thread:$0]  %s578_s1, 80, %s19_s20, [#allocation5], %s437_s29, %s437_s29, %s438_s30  }
  0x1f   :  { %431 = dma.done.wait [#allocation5], 80  }
  0x20   :  { %432 = vsyncadd [#allocation5], 4294967216  ;;  %v67_v0 = vlaneseq  ;;  %s320_s5 = sld [smem:[#allocation3 + $0x3]]  ;;  %s321_s6 = sld [smem:[#allocation3 + $0x4]]  ;;  %vm45_vm0 = vcmask 1040384   ;;  %vm47_vm1 = vcmask 1041408  }
  0x21   :  { %s322_s7 = sld [smem:[#allocation3 + $0x5]]  ;;  %s323_s8 = sld [smem:[#allocation3 + $0x6]]  ;;  %v65_v3 = vld [vmem:[#allocation4] sm:$0x1]  ;;  %v106_v31 = vld [vmem:[#allocation4 + $0x1] sm:$0x1] }
  0x22   :  { %v68_v1 = vshrl.u32 %v67_v0, 7  ;;  %s324_s9 = sld [smem:[#allocation3 + $0x7]]  ;;  %s325_s10 = sld [smem:[#allocation3 + $0x8]] }
  0x23   :  { %s326_s11 = sld [smem:[#allocation3 + $0x9]]  ;;  %s327_s12 = sld [smem:[#allocation3 + $0xa]] }
  0x24   :  { %v482_v2 = vsub.s32 0, %v68_v1  ;;  %s328_s13 = sld [smem:[#allocation3 + $0xb]]  ;;  %s318_s16 = sld [smem:[#allocation3 + $0x1]] }
  0x25   :  { %s28_s17 = sld [smem:[#allocation3]]  ;;  %s319_s18 = sld [smem:[#allocation3 + $0x2]] }
  0x26   :  { %v42_v4 = vstv %s320_s5  ;;  %v70_v5 = vrot.slane %v65_v3, %v482_v2  ;;  %v50_v6 = vstv %s321_s6  ;;  %v111_v34 = vrot.slane %v106_v31, %v482_v2  ;;  %s329_s19 = sld [smem:[#allocation3 + $0xc]]  ;;  %s439_s20 = smov [#allocation7]  }
  0x27   :  { %v43_v7 = vstv %s323_s8  ;;  %v56_v11 = vstv %s322_s7  ;;  %s306_s21 = sshll.u32 %s439_s20, 4  ;;  %s307_s21 = int_to_ptr.vmem [resolvable:$true] %s306_s21 }
  0x28   :  { %v51_v8 = vstv %s324_s9  ;;  %v72_v9 = vsel %vm45_vm0, %v65_v3, %v70_v5  ;;  %v46_v10 = vsel %vm45_vm0, %v42_v4, %v43_v7  ;;  %v57_v12 = vstv %s325_s10  ;;  %v155_v4 = vld [vmem:[#allocation4 + $0x2] sm:$0x1]  ;;  %s407_s22 = scalar_lea.vmem %s307_s21, 80  ;;  %s411_s23 = scalar_lea.vmem %s307_s21, 96 }
  0x29   :  { %s41_s1 = smul.f32 2.0, %s326_s11  ;;  %v53_v13 = vsel %vm45_vm0, %v50_v6, %v51_v8  ;;  %v73_v14 = vsel %vm47_vm1, %v72_v9, %v70_v5  ;;  %v59_v18 = vsel %vm45_vm0, %v56_v11, %v57_v12  ;;  %v113_v39 = vsel %vm45_vm0, %v106_v31, %v111_v34  ;;  %p408_p11 = scmp.ne.s32.totalorder %s307_s21, %s407_s22 }
  0x2a   :  { %s49_s14 = smul.f32 2.0, %s327_s12  ;;  %v503_v37 = vstv %s318_s16  ;;  %v114_v42 = vsel %vm47_vm1, %v113_v39, %v111_v34  ;;  %v160_v7 = vrot.slane %v155_v4, %v482_v2  ;;  %p412_p12 = scmp.lt.s32.totalorder %s307_s21, %s307_s21 }
  0x2b   :  { %v44_v15 = vstv %s41_s1  ;;  %s55_s15 = smul.f32 2.0, %s328_s13  ;;  %v86_v41 = vmul.f32 %v65_v3, %v503_v37  ;;  %v511_v49 = vstv %s28_s17  ;;  %v513_v50 = vstv %s319_s18  ;;  %p413_p13 = scmp.lt.s32.totalorder %s411_s23, %s407_s22 }
  0x2c   :  { %v490_v16 = vsel %vm47_vm1, %v46_v10, %v44_v15  ;;  %v52_v17 = vstv %s49_s14  ;;  %v89_v54 = vmul.f32 0.0, %v513_v50  ;;  %v518_v55 = vstv %s329_s19 }
  0x2d   :  { %v494_v19 = vsel %vm47_vm1, %v53_v13, %v52_v17  ;;  %v58_v20 = vstv %s55_s15  ;;  %v74_v21 = vmul.f32 %v73_v14, %v490_v16  ;;  %v122_v46 = vmul.f32 %v114_v42, %v490_v16  ;;  %p414_p0 = por %p413_p13, %p412_p12 }
  0x2e   :  { %v75_v22 = vmul.f32 0.0, %v494_v19  ;;  %v499_v23 = vsel %vm47_vm1, %v59_v18, %v58_v20  ;;  %v87_v47 = vmul.f32 %v86_v41, %v65_v3  ;;  %v162_v11 = vsel %vm45_vm0, %v155_v4, %v160_v7 }
  0x2f   :  { %v134_v13 = vmul.f32 %v106_v31, %v503_v37  ;;  %v163_v14 = vsel %vm47_vm1, %v162_v11, %v160_v7  ;;  %p415_p1 = pnand %p414_p0, %p408_p11 }
  0x30   :  { %v76_v24 = vadd.f32 %v75_v22, %v74_v21  ;;  %v88_v53 = vadd.f32 %v87_v47, %v511_v49  ;;  %v171_v20 = vmul.f32 %v163_v14, %v490_v16 }
  0x31   :  { %v135_v21 = vmul.f32 %v134_v13, %v106_v31 }
  0x32   :  { %v77_v25 = vadd.f32 %v76_v24, %v499_v23  ;;  %v90_v59 = vadd.f32 %v89_v54, %v88_v53 }
  0x34   :  { %v330_v26 = vmul.f32 -1.442695, %v77_v25 }
  0x36   :  { %345 = vpow2.f32 %v330_v26 }
  0x40   :  { %v346_v27 = vpop.eup %345 }
  0x41   :  { %v81_v28 = vadd.f32 1.0, %v346_v27  ;;  %v136_v27 = vadd.f32 %v135_v21, %v511_v49 }
  0x43   :  { %347 = vrcp.f32 %v81_v28 }
  0x4d   :  { %v348_v29 = vpop.eup %347 }
  0x4e   :  { %v84_v30 = vmul.f32 2.0, %v348_v29  ;;  %v91_v35 = vmul.f32 0.0, %v348_v29 }
  0x50   :  { %v331_v32 = vadd.f32 -1.0, %v84_v30 }
  0x52   :  { %v93_v33 = vrot.slane %v331_v32, 1 }
  0x54   :  { %v95_v36 = vmul.f32 %v348_v29, %v93_v33 }
  0x56   :  { %v97_v38 = vrot.slane %v95_v36, 1 }
  0x58   :  { %v99_v40 = vadd.f32 %v97_v38, %v91_v35 }
  0x5a   :  { %349 = vtanh.f32 %v99_v40  ;;  %v116_v43 = vrot.slane %v99_v40, 7  ;;  %v118_v44 = vrot.slane %v99_v40, 6 }
  0x5c   :  { %v120_v45 = vsel %vm45_vm0, %v99_v40, %v116_v43 }
  0x5d   :  { %v121_v48 = vsel %vm47_vm1, %v120_v45, %v118_v44 }
  0x5e   :  { %v123_v51 = vmul.f32 %v121_v48, %v494_v19 }
  0x60   :  { %v124_v52 = vadd.f32 %v123_v51, %v122_v46  ;;  %v183_v51 = vmul.f32 %v155_v4, %v503_v37 }
  0x62   :  { %v125_v56 = vadd.f32 %v124_v52, %v499_v23 }
  0x64   :  { %v350_v57 = vpop.eup %349  ;;  %v332_v58 = vmul.f32 -1.442695, %v125_v56 }
  0x65   :  { %v101_v60 = vmul.f32 %v350_v57, %v518_v55 }
  0x66   :  { %351 = vpow2.f32 %v332_v58  ;;  %v184_v58 = vmul.f32 %v183_v51, %v155_v4 }
  0x67   :  { %v102_v61 = vadd.f32 1.0, %v101_v60 }
  0x69   :  { %v103_v62 = vmul.f32 %v102_v61, %v90_v59 }
  0x6b   :  { %104 = vst [vmem:[#allocation7] sm:$0x1] %v103_v62  ;;  %v137_v26 = vmul.f32 %v103_v62, %v513_v50 }
  0x6d   :  { %v138_v32 = vadd.f32 %v137_v26, %v136_v27 }
  0x70   :  { %v352_v63 = vpop.eup %351 }
  0x71   :  { %v129_v0 = vadd.f32 1.0, %v352_v63  ;;  %v185_v63 = vadd.f32 %v184_v58, %v511_v49 }
  0x73   :  { %353 = vrcp.f32 %v129_v0 }
  0x7d   :  { %v354_v1 = vpop.eup %353 }
  0x7e   :  { %v132_v3 = vmul.f32 2.0, %v354_v1  ;;  %v139_v8 = vmul.f32 %v354_v1, %v99_v40  ;;  %v204_v40 = vld [vmem:[#allocation4 + $0x3] sm:$0x1] }
  0x7f   :  { %v209_v43 = vrot.slane %v204_v40, %v482_v2 }
  0x80   :  { %v333_v5 = vadd.f32 -1.0, %v132_v3 }
  0x81   :  { %v211_v47 = vsel %vm45_vm0, %v204_v40, %v209_v43 }
  0x82   :  { %v141_v6 = vrot.slane %v333_v5, 1  ;;  %v212_v52 = vsel %vm47_vm1, %v211_v47, %v209_v43 }
  0x83   :  { %v220_v57 = vmul.f32 %v212_v52, %v490_v16 }
  0x84   :  { %v143_v9 = vmul.f32 %v354_v1, %v141_v6 }
  0x86   :  { %v145_v10 = vrot.slane %v143_v9, 1 }
  0x88   :  { %v147_v12 = vadd.f32 %v145_v10, %v139_v8 }
  0x8a   :  { %355 = vtanh.f32 %v147_v12  ;;  %v165_v15 = vrot.slane %v147_v12, 7  ;;  %v167_v17 = vrot.slane %v147_v12, 6 }
  0x8c   :  { %v169_v18 = vsel %vm45_vm0, %v147_v12, %v165_v15 }
  0x8d   :  { %v170_v22 = vsel %vm47_vm1, %v169_v18, %v167_v17 }
  0x8e   :  { %v172_v24 = vmul.f32 %v170_v22, %v494_v19 }
  0x90   :  { %v173_v25 = vadd.f32 %v172_v24, %v171_v20  ;;  %v232_v24 = vmul.f32 %v204_v40, %v503_v37 }
  0x92   :  { %v174_v28 = vadd.f32 %v173_v25, %v499_v23 }
  0x94   :  { %v356_v29 = vpop.eup %355  ;;  %v334_v30 = vmul.f32 -1.442695, %v174_v28 }
  0x95   :  { %v149_v33 = vmul.f32 %v356_v29, %v518_v55 }
  0x96   :  { %357 = vpow2.f32 %v334_v30  ;;  %v233_v30 = vmul.f32 %v232_v24, %v204_v40 }
  0x97   :  { %v150_v34 = vadd.f32 1.0, %v149_v33 }
  0x99   :  { %v151_v35 = vmul.f32 %v150_v34, %v138_v32 }
  0x9b   :  { %153 = vst [vmem:[#allocation7 + $0x1] sm:$0x1] %v151_v35  ;;  %v186_v62 = vmul.f32 %v151_v35, %v513_v50  ;;  %v234_v35 = vadd.f32 %v233_v30, %v511_v49 }
  0x9d   :  { %v187_v5 = vadd.f32 %v186_v62, %v185_v63 }
  0xa0   :  { %v358_v31 = vpop.eup %357 }
  0xa1   :  { %v178_v36 = vadd.f32 1.0, %v358_v31 }
  0xa3   :  { %359 = vrcp.f32 %v178_v36 }
  0xad   :  { %v360_v38 = vpop.eup %359 }
  0xae   :  { %v181_v39 = vmul.f32 2.0, %v360_v38  ;;  %v188_v44 = vmul.f32 %v360_v38, %v147_v12  ;;  %v253_v12 = vld [vmem:[#allocation4 + $0x4] sm:$0x1] }
  0xaf   :  { %v258_v15 = vrot.slane %v253_v12, %v482_v2  ;;  %v281_v52 = vmul.f32 %v253_v12, %v503_v37 }
  0xb0   :  { %v335_v41 = vadd.f32 -1.0, %v181_v39 }
  0xb1   :  { %v260_v21 = vsel %vm45_vm0, %v253_v12, %v258_v15 }
  0xb2   :  { %v190_v42 = vrot.slane %v335_v41, 1  ;;  %v261_v25 = vsel %vm47_vm1, %v260_v21, %v258_v15 }
  0xb3   :  { %v269_v29 = vmul.f32 %v261_v25, %v490_v16 }
  0xb4   :  { %v192_v45 = vmul.f32 %v360_v38, %v190_v42 }
  0xb6   :  { %v194_v46 = vrot.slane %v192_v45, 1 }
  0xb8   :  { %v196_v48 = vadd.f32 %v194_v46, %v188_v44 }
  0xba   :  { %361 = vtanh.f32 %v196_v48  ;;  %v214_v53 = vrot.slane %v196_v48, 7  ;;  %v216_v54 = vrot.slane %v196_v48, 6 }
  0xbc   :  { %v218_v56 = vsel %vm45_vm0, %v196_v48, %v214_v53  ;;  %v282_v53 = vmul.f32 %v281_v52, %v253_v12 }
  0xbd   :  { %v219_v59 = vsel %vm47_vm1, %v218_v56, %v216_v54 }
  0xbe   :  { %v221_v60 = vmul.f32 %v219_v59, %v494_v19  ;;  %v283_v56 = vadd.f32 %v282_v53, %v511_v49 }
  0xc0   :  { %v222_v61 = vadd.f32 %v221_v60, %v220_v57 }
  0xc2   :  { %v223_v0 = vadd.f32 %v222_v61, %v499_v23 }
  0xc4   :  { %v362_v1 = vpop.eup %361  ;;  %v336_v3 = vmul.f32 -1.442695, %v223_v0 }
  0xc5   :  { %v198_v6 = vmul.f32 %v362_v1, %v518_v55 }
  0xc6   :  { %363 = vpow2.f32 %v336_v3 }
  0xc7   :  { %v199_v7 = vadd.f32 1.0, %v198_v6 }
  0xc9   :  { %v200_v8 = vmul.f32 %v199_v7, %v187_v5 }
  0xcb   :  { %202 = vst [vmem:[#allocation7 + $0x2] sm:$0x1] %v200_v8  ;;  %v235_v34 = vmul.f32 %v200_v8, %v513_v50 }
  0xcd   :  { %v236_v39 = vadd.f32 %v235_v34, %v234_v35 }
  0xd0   :  { %v364_v4 = vpop.eup %363 }
  0xd1   :  { %v227_v9 = vadd.f32 1.0, %v364_v4 }
  0xd3   :  { %365 = vrcp.f32 %v227_v9 }
  0xdd   :  { %v366_v10 = vpop.eup %365 }
  0xde   :  { %v230_v11 = vmul.f32 2.0, %v366_v10  ;;  %v237_v17 = vmul.f32 %v366_v10, %v196_v48 }
  0xe0   :  { %v337_v13 = vadd.f32 -1.0, %v230_v11 }
  0xe2   :  { %v239_v14 = vrot.slane %v337_v13, 1 }
  0xe4   :  { %v241_v18 = vmul.f32 %v366_v10, %v239_v14 }
  0xe6   :  { %v243_v20 = vrot.slane %v241_v18, 1 }
  0xe8   :  { %v245_v22 = vadd.f32 %v243_v20, %v237_v17 }
  0xea   :  { %367 = vtanh.f32 %v245_v22  ;;  %v263_v26 = vrot.slane %v245_v22, 7  ;;  %v265_v27 = vrot.slane %v245_v22, 6 }
  0xec   :  { %v267_v28 = vsel %vm45_vm0, %v245_v22, %v263_v26 }
  0xed   :  { %v268_v2 = vsel %vm47_vm1, %v267_v28, %v265_v27 }
  0xee   :  { %v270_v32 = vmul.f32 %v268_v2, %v494_v19 }
  0xf0   :  { %v271_v33 = vadd.f32 %v270_v32, %v269_v29 }
  0xf2   :  { %v272_v31 = vadd.f32 %v271_v33, %v499_v23 }
  0xf4   :  { %v368_v36 = vpop.eup %367  ;;  %v338_v38 = vmul.f32 -1.442695, %v272_v31 }
  0xf5   :  { %v247_v41 = vmul.f32 %v368_v36, %v518_v55 }
  0xf6   :  { %369 = vpow2.f32 %v338_v38 }
  0xf7   :  { %v248_v42 = vadd.f32 1.0, %v247_v41 }
  0xf9   :  { %v249_v16 = vmul.f32 %v248_v42, %v236_v39 }
  0xfb   :  { %251 = vst [vmem:[#allocation7 + $0x3] sm:$0x1] %v249_v16  ;;  %v284_v54 = vmul.f32 %v249_v16, %v513_v50 }
  0xfd   :  { %v285_v58 = vadd.f32 %v284_v54, %v283_v56 }
 0x100   :  { %v370_v40 = vpop.eup %369 }
 0x101   :  { %v276_v43 = vadd.f32 1.0, %v370_v40 }
 0x103   :  { %371 = vrcp.f32 %v276_v43 }
 0x10d   :  { %v372_v19 = vpop.eup %371 }
 0x10e   :  { %v279_v44 = vmul.f32 2.0, %v372_v19  ;;  %v286_v47 = vmul.f32 %v372_v19, %v245_v22 }
 0x110   :  { %v339_v45 = vadd.f32 -1.0, %v279_v44 }
 0x112   :  { %v288_v46 = vrot.slane %v339_v45, 1 }
 0x114   :  { %v290_v48 = vmul.f32 %v372_v19, %v288_v46 }
 0x116   :  { %v292_v51 = vrot.slane %v290_v48, 1 }
 0x118   :  { %v294_v23 = vadd.f32 %v292_v51, %v286_v47 }
 0x11a   :  { %373 = vtanh.f32 %v294_v23 }
 0x124   :  { %v374_v57 = vpop.eup %373 }
 0x125   :  { %v296_v59 = vmul.f32 %v374_v57, %v518_v55 }
 0x127   :  { %v297_v60 = vadd.f32 1.0, %v296_v59 }
 0x129   :  { %v298_v61 = vmul.f32 %v297_v60, %v285_v58 }
 0x12b   :  { %300 = vst [vmem:[#allocation7 + $0x4] sm:$0x1] %v298_v61 }
 0x12c   :  { %418 = shalt.err (!%p415_p1)
}
 0x12d   :  { %s419_s26 = scalar_lea.hbm %s579_s2, 80 }
 0x12e   :  { %p420_p2 = scmp.ne.s32.totalorder %s579_s2, %s419_s26  ;;  %p423_p3 = scmp.lt.u32.totalorder %s419_s26, %s579_s2 }
 0x130   :  { %p425_p4 = pnand %p423_p3, %p420_p2 }
 0x132   :  { %428 = shalt.err (!%p425_p4)
}
 0x133   :  { %312 = dma.vmem_to_hbm [thread:$0]  %s307_s21, 80, %s579_s2, [#allocation6], %s437_s29, %s437_s29, %s438_s30  }
 0x134   :  { %433 = dma.done.wait [#allocation6], 80  }
 0x135   :  { %434 = vsyncadd [#allocation6], 4294967216 }
 0x136   :  { %316 = vsyncpa [#allocation5], 1 }
 0x137   :  { %317 = vsyncpa [#allocation6], 1 }

</bundles_post_ra>
